<compile_context>
chip_gen: v6e
topology: v6e:2x2x1
jax: 0.10.0
libtpu: 0.0.40
codegen_flags: <defaults>
</compile_context>

<pallas_src>
from functools import partial

import jax
import jax.numpy as jnp
from jax.experimental import pallas as pl
from jax.experimental.pallas import tpu as pltpu

SIGMA = 0.1
LANES = 128
TM_TARGET = 1024  # max rows per block (sweetspot per perf review: 512-2048)


# ---------------------------------------------------------------------------
# Pass 1: global min / max reduction.
#   Element-wise fold into an (8, 128) VMEM accumulator every step (VPU),
#   single cross-lane reduce at the last grid step (XLU, once).
# ---------------------------------------------------------------------------
def _minmax_kernel(x_ref, min_ref, max_ref, min_acc, max_acc):
    i = pl.program_id(0)

    @pl.when(i == 0)
    def _():
        min_acc[...] = jnp.full_like(min_acc, jnp.inf)
        max_acc[...] = jnp.full_like(max_acc, -jnp.inf)

    xb = x_ref[...]                              # (TM, 128)
    xr = xb.reshape(-1, 8, LANES)                # (TM//8, 8, 128), layout no-op
    min_acc[...] = jnp.minimum(min_acc[...], jnp.min(xr, axis=0))
    max_acc[...] = jnp.maximum(max_acc[...], jnp.max(xr, axis=0))

    @pl.when(i == pl.num_programs(0) - 1)
    def _():
        min_ref[...] = jnp.min(min_acc[...]).reshape(1, 1)
        max_ref[...] = jnp.max(max_acc[...]).reshape(1, 1)


# ---------------------------------------------------------------------------
# Pass 2: Rayleigh transform + add + clamp (fully element-wise, "parallel").
#   Rayleigh(sigma) = sigma * sqrt(-2 * ln(1 - U)),  U ~ Uniform[0, 1)
# ---------------------------------------------------------------------------
def _noise_clamp_kernel(min_ref, max_ref, x_ref, u_ref, o_ref, *, sigma):
    lo = min_ref[0, 0]
    hi = max_ref[0, 0]
    u = u_ref[...]                               # [0, 1)  ->  1 - u in (0, 1]
    noise = sigma * jnp.sqrt(-2.0 * jnp.log(1.0 - u))
    o_ref[...] = jnp.clip(x_ref[...] + noise, lo, hi)


# ---------------------------------------------------------------------------
# Wrapper
# ---------------------------------------------------------------------------
def _round_up(n, m):
    return ((n + m - 1) // m) * m


def rayleigh_noise(x, sigma=SIGMA, seed=0):
    orig_shape = x.shape
    orig_dtype = x.dtype

    xf = x.astype(jnp.float32).reshape(-1)
    total = xf.size

    # Lane-dense 2D slab, padded with a replicated edge value so the padding
    # cannot affect the global min/max; padded outputs are sliced off.
    rows = pl.cdiv(total, LANES)
    tm = min(TM_TARGET, _round_up(rows, 8))      # block height, multiple of 8
    rows_pad = _round_up(rows, tm)
    pad = rows_pad * LANES - total
    if pad:
        xf = jnp.concatenate([xf, jnp.broadcast_to(xf[:1], (pad,))])
    x2 = xf.reshape(rows_pad, LANES)
    grid = (rows_pad // tm,)

    # ---------------- Pass 1: global min / max ----------------
    min_v, max_v = pl.pallas_call(
        _minmax_kernel,
        out_shape=(
            jax.ShapeDtypeStruct((1, 1), jnp.float32),
            jax.ShapeDtypeStruct((1, 1), jnp.float32),
        ),
        grid_spec=pltpu.PrefetchScalarGridSpec(
            num_scalar_prefetch=0,
            grid=grid,
            in_specs=[pl.BlockSpec((tm, LANES), lambda i: (i, 0))],
            out_specs=(
                pl.BlockSpec((1, 1), lambda i: (0, 0)),
                pl.BlockSpec((1, 1), lambda i: (0, 0)),
            ),
            scratch_shapes=[
                pltpu.VMEM((8, LANES), jnp.float32),
                pltpu.VMEM((8, LANES), jnp.float32),
            ],
        ),
        compiler_params=pltpu.CompilerParams(
            dimension_semantics=("arbitrary",)),
    )(x2)

    # Uniform samples generated outside the kernel (grid/tile-invariant).
    # TODO(synk): the in-kernel stateful TPU PRNG (pltpu.prng_seed /
    # prng_random_bits) has no interpret/CPU lowering, so bits are produced
    # host-side with jax.random, mirroring the numpy RNG in the reference.
    u = jax.random.uniform(jax.random.PRNGKey(seed), (rows_pad, LANES),
                           dtype=jnp.float32)

    # ---------------- Pass 2: noise + clamp ----------------
    out2 = pl.pallas_call(
        partial(_noise_clamp_kernel, sigma=float(sigma)),
        out_shape=jax.ShapeDtypeStruct((rows_pad, LANES), jnp.float32),
        grid_spec=pltpu.PrefetchScalarGridSpec(
            num_scalar_prefetch=0,
            grid=grid,
            in_specs=[
                pl.BlockSpec(memory_space=pltpu.MemorySpace.SMEM),  # min (1,1)
                pl.BlockSpec(memory_space=pltpu.MemorySpace.SMEM),  # max (1,1)
                pl.BlockSpec((tm, LANES), lambda i: (i, 0)),        # x
                pl.BlockSpec((tm, LANES), lambda i: (i, 0)),        # uniform
            ],
            out_specs=pl.BlockSpec((tm, LANES), lambda i: (i, 0)),
        ),
        compiler_params=pltpu.CompilerParams(
            dimension_semantics=("parallel",)),
    )(min_v, max_v, x2, u)

    out = out2.reshape(-1)[:total].reshape(orig_shape)
    return out.astype(orig_dtype)


if __name__ == "__main__":
    key = jax.random.PRNGKey(0)
    x = jax.random.normal(key, (2, 4, 16, 16), dtype=jnp.float32)  # NCHW

    out = rayleigh_noise(x, sigma=SIGMA, seed=0)
    out = jax.block_until_ready(out)

    # Sanity checks mirroring the reference semantics.
    lo = float(jnp.min(x))
    hi = float(jnp.max(x))
    assert out.shape == x.shape
    assert bool(jnp.all(jnp.isfinite(out)))
    assert float(jnp.min(out)) >= lo - 1e-6
    assert float(jnp.max(out)) <= hi + 1e-6
    # Rayleigh noise is non-negative, so out >= x (up to the upper clamp).
    assert bool(jnp.all(out >= jnp.minimum(x, hi) - 1e-6))

    print("KERNEL_OK")
</pallas_src>

<mosaic_0001>
module attributes {stable_mosaic.version = 11 : i64} {
  func.func @_minmax_kernel(%arg0: i32, %arg1: memref<16x128xf32, #tpu.memory_space<vmem>>, %arg2: memref<1x1xf32, #tpu.memory_space<vmem>>, %arg3: memref<1x1xf32, #tpu.memory_space<vmem>>, %arg4: memref<8x128xf32, #tpu.memory_space<vmem>>, %arg5: memref<8x128xf32, #tpu.memory_space<vmem>>) attributes {dimension_semantics = [#tpu.dimension_semantics<arbitrary>], iteration_bounds = array<i64: 1>, scalar_prefetch = 0 : i64, scratch_operands = 2 : i64, tpu.core_type = #tpu.core_type<tc>, window_params = [{transform_indices = @transform_0, window_bounds = array<i64: 16, 128>}, {pipeline_mode = #tpu.pipeline_mode<synchronous>, transform_indices = @transform_1, window_bounds = array<i64: 1, 1>}, {pipeline_mode = #tpu.pipeline_mode<synchronous>, transform_indices = @transform_2, window_bounds = array<i64: 1, 1>}]} {
    %c0_i32 = arith.constant 0 : i32
    %0 = arith.cmpi eq, %arg0, %c0_i32 : i32
    %1 = arith.extui %0 : i1 to i32
    %c0_i32_0 = arith.constant 0 : i32
    %2 = arith.cmpi ne, %1, %c0_i32_0 : i32
    scf.if %2 {
      %cst_13 = arith.constant 0x7F800000 : f32
      %16 = vector.broadcast %cst_13 : f32 to vector<8x128xf32>
      %c0_14 = arith.constant 0 : index
      %c0_15 = arith.constant 0 : index
      %17 = vector.load %arg4[%c0_14, %c0_15] : memref<8x128xf32, #tpu.memory_space<vmem>>, vector<8x128xf32>
      tpu.vector_store %arg4[%c0_14, %c0_15], %16 {strides = array<i32>} : memref<8x128xf32, #tpu.memory_space<vmem>>, vector<8x128xf32>,
      %cst_16 = arith.constant 0xFF800000 : f32
      %18 = vector.broadcast %cst_16 : f32 to vector<8x128xf32>
      %c0_17 = arith.constant 0 : index
      %c0_18 = arith.constant 0 : index
      %19 = vector.load %arg5[%c0_17, %c0_18] : memref<8x128xf32, #tpu.memory_space<vmem>>, vector<8x128xf32>
      tpu.vector_store %arg5[%c0_17, %c0_18], %18 {strides = array<i32>} : memref<8x128xf32, #tpu.memory_space<vmem>>, vector<8x128xf32>,
    } else {
    }
    %c0 = arith.constant 0 : index
    %c0_1 = arith.constant 0 : index
    %3 = vector.load %arg1[%c0, %c0_1] : memref<16x128xf32, #tpu.memory_space<vmem>>, vector<16x128xf32>
    %4 = vector.shape_cast %3 : vector<16x128xf32> to vector<2x8x128xf32>
    %c0_2 = arith.constant 0 : index
    %c0_3 = arith.constant 0 : index
    %5 = vector.load %arg4[%c0_2, %c0_3] : memref<8x128xf32, #tpu.memory_space<vmem>>, vector<8x128xf32>
    %cst = arith.constant dense<0x7F800000> : vector<8x128xf32>
    %6 = vector.multi_reduction <minimumf>, %4, %cst [0] : vector<2x8x128xf32> to vector<8x128xf32>
    %7 = arith.minimumf %5, %6 : vector<8x128xf32>
    %c0_4 = arith.constant 0 : index
    %c0_5 = arith.constant 0 : index
    %8 = vector.load %arg4[%c0_4, %c0_5] : memref<8x128xf32, #tpu.memory_space<vmem>>, vector<8x128xf32>
    tpu.vector_store %arg4[%c0_4, %c0_5], %7 {strides = array<i32>} : memref<8x128xf32, #tpu.memory_space<vmem>>, vector<8x128xf32>,
    %c0_6 = arith.constant 0 : index
    %c0_7 = arith.constant 0 : index
    %9 = vector.load %arg5[%c0_6, %c0_7] : memref<8x128xf32, #tpu.memory_space<vmem>>, vector<8x128xf32>
    %cst_8 = arith.constant dense<0xFF800000> : vector<8x128xf32>
    %10 = vector.multi_reduction <maximumf>, %4, %cst_8 [0] : vector<2x8x128xf32> to vector<8x128xf32>
    %11 = arith.maximumf %9, %10 : vector<8x128xf32>
    %c0_9 = arith.constant 0 : index
    %c0_10 = arith.constant 0 : index
    %12 = vector.load %arg5[%c0_9, %c0_10] : memref<8x128xf32, #tpu.memory_space<vmem>>, vector<8x128xf32>
    tpu.vector_store %arg5[%c0_9, %c0_10], %11 {strides = array<i32>} : memref<8x128xf32, #tpu.memory_space<vmem>>, vector<8x128xf32>,
    %c0_i32_11 = arith.constant 0 : i32
    %13 = arith.cmpi eq, %arg0, %c0_i32_11 : i32
    %14 = arith.extui %13 : i1 to i32
    %c0_i32_12 = arith.constant 0 : i32
    %15 = arith.cmpi ne, %14, %c0_i32_12 : i32
    scf.if %15 {
      %c0_13 = arith.constant 0 : index
      %c0_14 = arith.constant 0 : index
      %16 = vector.load %arg4[%c0_13, %c0_14] : memref<8x128xf32, #tpu.memory_space<vmem>>, vector<8x128xf32>
      %17 = vector.shape_cast %16 : vector<8x128xf32> to vector<1x8x128xf32>
      %cst_15 = arith.constant dense<0x7F800000> : vector<1xf32>
      %18 = vector.multi_reduction <minimumf>, %17, %cst_15 [1, 2] : vector<1x8x128xf32> to vector<1xf32>
      %19 = vector.shape_cast %18 : vector<1xf32> to vector<1x1x1xf32>
      %20 = vector.extract %19[0, 0, 0] : f32 from vector<1x1x1xf32>
      %21 = vector.broadcast %20 : f32 to vector<1x1xf32>
      %c0_16 = arith.constant 0 : index
      %c0_17 = arith.constant 0 : index
      %22 = vector.load %arg2[%c0_16, %c0_17] : memref<1x1xf32, #tpu.memory_space<vmem>>, vector<1x1xf32>
      tpu.vector_store %arg2[%c0_16, %c0_17], %21 {strides = array<i32>} : memref<1x1xf32, #tpu.memory_space<vmem>>, vector<1x1xf32>,
      %c0_18 = arith.constant 0 : index
      %c0_19 = arith.constant 0 : index
      %23 = vector.load %arg5[%c0_18, %c0_19] : memref<8x128xf32, #tpu.memory_space<vmem>>, vector<8x128xf32>
      %24 = vector.shape_cast %23 : vector<8x128xf32> to vector<1x8x128xf32>
      %cst_20 = arith.constant dense<0xFF800000> : vector<1xf32>
      %25 = vector.multi_reduction <maximumf>, %24, %cst_20 [1, 2] : vector<1x8x128xf32> to vector<1xf32>
      %26 = vector.shape_cast %25 : vector<1xf32> to vector<1x1x1xf32>
      %27 = vector.extract %26[0, 0, 0] : f32 from vector<1x1x1xf32>
      %28 = vector.broadcast %27 : f32 to vector<1x1xf32>
      %c0_21 = arith.constant 0 : index
      %c0_22 = arith.constant 0 : index
      %29 = vector.load %arg3[%c0_21, %c0_22] : memref<1x1xf32, #tpu.memory_space<vmem>>, vector<1x1xf32>
      tpu.vector_store %arg3[%c0_21, %c0_22], %28 {strides = array<i32>} : memref<1x1xf32, #tpu.memory_space<vmem>>, vector<1x1xf32>,
    } else {
    }
    return
  }
  func.func @transform_0(%arg0: i32) -> (i32, i32) {
    %c0_i32 = arith.constant 0 : i32
    %c0_i32_0 = arith.constant 0 : i32
    return %arg0, %c0_i32 : i32, i32
  }
  func.func @transform_1(%arg0: i32) -> (i32, i32) {
    %c0_i32 = arith.constant 0 : i32
    %c0_i32_0 = arith.constant 0 : i32
    %c0_i32_1 = arith.constant 0 : i32
    return %c0_i32, %c0_i32_0 : i32, i32
  }
  func.func @transform_2(%arg0: i32) -> (i32, i32) {
    %c0_i32 = arith.constant 0 : i32
    %c0_i32_0 = arith.constant 0 : i32
    %c0_i32_1 = arith.constant 0 : i32
    return %c0_i32, %c0_i32_0 : i32, i32
  }
}

</mosaic_0001>

<bundles_post_ra>
// kernel: tpu_custom_call.1
= control target key start
LH: loop header
LB: loop body
LE: loop exit
PB: predicated region body
PF: predicated region fallthrough
CT: control target
= control target key end

     0   :  { %8 = vsyncpa [#allocation5], 0  ;;  %s205_s0 = inlined_call_operand.hbm [shape: f32[16,128], index: 0, kind: input, shape index: {}]   ;;  %s206_s1 = inlined_call_operand.hbm [shape: f32[1,1], index: 1, kind: output, shape index: {0}]   ;;  %s207_s2 = inlined_call_operand.hbm [shape: f32[1,1], index: 2, kind: output, shape index: {1}]  }
   0x1   :  { %9 = vsyncpa [#allocation6], 0 }
   0x2   :  { %10 = vsyncpa [#allocation9], 0  ;;  %s174_s9 = smov [#allocation4]  }
   0x3   :  { %s16_s10 = sshll.u32 %s174_s9, 4  ;;  %s17_s10 = int_to_ptr.vmem [resolvable:$true] %s16_s10 }
   0x4   :  { %s116_s11 = scalar_lea.vmem %s17_s10, 256  ;;  %p121_p1 = scmp.lt.s32.totalorder %s17_s10, %s17_s10 }
   0x5   :  { %p117_p0 = scmp.ne.s32.totalorder %s17_s10, %s116_s11  ;;  %p122_p2 = scmp.lt.s32.totalorder %s116_s11, %s116_s11 }
   0x7   :  { %p123_p3 = por %p122_p2, %p121_p1 }
   0x9   :  { %p124_p4 = pnand %p123_p3, %p117_p0 }
   0xb   :  { %127 = shalt.err (!%p124_p4)
}
   0xc   :  { %s175_s12 = smov 128   ;;  %s176_s13 = smov 8  }
   0xd   :  { %22 = dma.hbm_to_vmem [thread:$0]  %s205_s0, 256, %s17_s10, [#allocation5], %s175_s12, %s175_s12, %s176_s13  }
   0xe   :  { %168 = dma.done.wait [#allocation5], 256  }
   0xf   :  { %169 = vsyncadd [#allocation5], 4294967040  ;;  %v32_v0 = vld [vmem:[#allocation4] sm:$0xff]  ;;  %v33_v1 = vld [vmem:[#allocation4 + $0x8] sm:$0xff]  ;;  %s177_s0 = smov [#allocation7]   ;;  %vm56_vm0 = vcmask 0  }
  0x10   :  { %v35_v2 = vmin.f32 %v32_v0, %v33_v1  ;;  %v39_v3 = vmax.f32 %v32_v0, %v33_v1  ;;  %s76_s16 = sshll.u32 %s177_s0, 4  ;;  %s178_s18 = smov [#allocation8]   ;;  %s77_s16 = int_to_ptr.vmem [resolvable:$true] %s76_s16 }
  0x11   :  { %s86_s19 = sshll.u32 %s178_s18, 4  ;;  %s128_s20 = scalar_lea.vmem %s77_s16, 16  ;;  %s87_s19 = int_to_ptr.vmem [resolvable:$true] %s86_s19 }
  0x12   :  { %46 = vmin.xlane.f32.xlu0 %v35_v2  ;;  %p129_p5 = scmp.ne.s32.totalorder %s77_s16, %s128_s20  ;;  %s132_s21 = scalar_lea.vmem %s77_s16, 32 }
  0x13   :  { %p133_p6 = scmp.lt.s32.totalorder %s77_s16, %s77_s16  ;;  %p134_p7 = scmp.lt.s32.totalorder %s132_s21, %s128_s20 }
  0x15   :  { %p135_p8 = por %p134_p7, %p133_p6 }
  0x16   :  { %59 = vmax.xlane.f32.xlu0 %v39_v3 }
  0x17   :  { %p136_p9 = pnand %p135_p8, %p129_p5 }
  0x9b   :  { %v47_v4 = vpop.xlane.xlu0 %46 }
  0x9c   :  { %v48_v5 = vrot.slane %v47_v4, 4 }
  0x9e   :  { %v49_v6 = vmin.f32 %v47_v4, %v48_v5 }
  0x9f   :  { %v60_v7 = vpop.xlane.xlu0 %59 }
  0xa0   :  { %v50_v8 = vrot.slane %v49_v6, 2  ;;  %v61_v9 = vrot.slane %v60_v7, 4 }
  0xa2   :  { %v62_v10 = vmax.f32 %v60_v7, %v61_v9  ;;  %v51_v11 = vmin.f32 %v49_v6, %v50_v8 }
  0xa4   :  { %v63_v12 = vrot.slane %v62_v10, 2  ;;  %v52_v13 = vrot.slane %v51_v11, 1 }
  0xa6   :  { %v64_v14 = vmax.f32 %v62_v10, %v63_v12  ;;  %v53_v15 = vmin.f32 %v51_v11, %v52_v13 }
  0xa8   :  { %99 = vpush %v53_v15  ;;  %v65_v16 = vrot.slane %v64_v14, 1 }
  0xaa   :  { %v66_v17 = vmax.f32 %v64_v14, %v65_v16 }
  0xac   :  { %101 = vpush %v66_v17 }
  0xd9   :  { %s100_s17 = spop %99 }
  0xda   :  { %v55_v18 = vstv %s100_s17 }
  0xdb   :  { %57 = vst.msk [vmem:[#allocation7] sm:$0x1] %vm56_vm0, %v55_v18 }
  0xdc   :  { %139 = shalt.err (!%p136_p9)
}
  0xdd   :  { %79 = dma.vmem_to_hbm [thread:$0]  %s77_s16, 16, %s206_s1, [#allocation6]  }
  0xde   :  { %s102_s24 = spop %101  ;;  %s148_s25 = scalar_lea.vmem %s87_s19, 16 }
  0xdf   :  { %v68_v19 = vstv %s102_s24  ;;  %p149_p10 = scmp.ne.s32.totalorder %s87_s19, %s148_s25  ;;  %s152_s26 = scalar_lea.vmem %s87_s19, 32 }
  0xe0   :  { %69 = vst.msk [vmem:[#allocation8] sm:$0x1] %vm56_vm0, %v68_v19  ;;  %p153_p11 = scmp.lt.s32.totalorder %s87_s19, %s87_s19  ;;  %p154_p12 = scmp.lt.s32.totalorder %s152_s26, %s148_s25 }
  0xe2   :  { %p155_p13 = por %p154_p12, %p153_p11 }
  0xe4   :  { %p156_p0 = pnand %p155_p13, %p149_p10 }
  0xe6   :  { %159 = shalt.err (!%p156_p0)
}
  0xe7   :  { %89 = dma.vmem_to_hbm [thread:$0]  %s87_s19, 16, %s207_s2, [#allocation9]  }
  0xe8   :  { %170 = dma.done.wait [#allocation6], 16  }
  0xe9   :  { %171 = vsyncadd [#allocation6], 4294967280 }
  0xea   :  { %172 = dma.done.wait [#allocation9], 16  }
  0xeb   :  { %173 = vsyncadd [#allocation9], 4294967280 }
  0xec   :  { %96 = vsyncpa [#allocation5], 1 }
  0xed   :  { %97 = vsyncpa [#allocation6], 1 }
  0xee   :  { %98 = vsyncpa [#allocation9], 1 }

</bundles_post_ra>
